<compile_context>
chip_gen: v7x
topology: tpu7x:2x2x1
jax: 0.10.0
libtpu: 0.0.40
codegen_flags: <defaults>
</compile_context>

<pallas_src>
import math

import jax
import jax.numpy as jnp
from jax.experimental import pallas as pl
from jax.experimental.pallas import tpu as pltpu


def _round_up(x, m):
    return ((x + m - 1) // m) * m


def _sublane(dtype):
    # Sublane alignment by element width (f32: 8, bf16: 16, int8/fp8: 32).
    return {4: 8, 2: 16, 1: 32}.get(jnp.dtype(dtype).itemsize, 8)


def _default_tiles(compute_dtype):
    if jnp.dtype(compute_dtype).itemsize >= 4:
        return 512, 1024, 512      # tm, tn, tk for f32
    return 1024, 1024, 1024        # bf16 / int8: half the bytes per element


def _pick_tile_m(m, tm_max, sub):
    """Largest sub-aligned tm <= tm_max keeping M-padding waste under ~15%."""
    m_sub = _round_up(m, sub)
    tm_max = max(sub, _round_up(tm_max, sub))
    if m_sub <= tm_max:
        return m_sub               # single tile, zero waste
    tm = tm_max
    while tm > sub and _round_up(m, tm) > 1.15 * m_sub:
        tm = max(sub, _round_up(tm // 2, sub))
    return tm


# --------------------------------------------------------------------------- #
# Kernel: one (tm, tn) output tile; K is the innermost ("arbitrary") grid axis.
# --------------------------------------------------------------------------- #
def _linear_kernel(x_ref, w_ref, b_ref, o_ref, acc_ref):
    k = pl.program_id(2)

    @pl.when(k == 0)
    def _():
        # Seed the f32 accumulator with the (broadcast) bias — no zero fill and
        # no separate bias add in the epilogue.
        acc_ref[...] = jnp.broadcast_to(b_ref[...], acc_ref.shape)

    # x tile: (tm, tk); weight tile is K-major (tk, tn): natural MXU layout,
    # no transpose anywhere.
    acc_ref[...] += jnp.dot(x_ref[...], w_ref[...],
                            preferred_element_type=jnp.float32)

    @pl.when(k == pl.num_programs(2) - 1)
    def _():
        o_ref[...] = acc_ref[...].astype(o_ref.dtype)


# --------------------------------------------------------------------------- #
# One-time parameter prep (transpose to K-major + pad + cast).  Do this ONCE
# per layer, not per call.
# --------------------------------------------------------------------------- #
def prepare_linear_norm_params(weight, bias=None, *, compute_dtype=None,
                               tn=None, tk=None):
    """weight: (out_dim, in_dim) [PyTorch layout]; bias: (out_dim,) or None."""
    out_dim, in_dim = weight.shape
    compute_dtype = jnp.dtype(compute_dtype or weight.dtype)
    tm_d, tn_d, tk_d = _default_tiles(compute_dtype)

    tn = max(128, min(tn or tn_d, _round_up(out_dim, 128)))
    tk = max(128, min(tk or tk_d, _round_up(in_dim, 128)))
    n_pad = _round_up(out_dim, tn)
    k_pad = _round_up(in_dim, tk)

    # K-major weight (in_dim, out_dim), padded once; zeros are benign for the
    # contraction and for the (sliced-off) padded output columns.
    w_km = jnp.asarray(weight).T.astype(compute_dtype)
    if (k_pad, n_pad) != (in_dim, out_dim):
        w_km = jnp.pad(w_km, ((0, k_pad - in_dim), (0, n_pad - out_dim)))

    if bias is None:
        b_row = jnp.zeros((1, n_pad), jnp.float32)
    else:
        b_row = jnp.asarray(bias, dtype=jnp.float32).reshape(1, out_dim)
        if n_pad != out_dim:
            b_row = jnp.pad(b_row, ((0, 0), (0, n_pad - out_dim)))

    return dict(w=w_km, b=b_row, in_dim=in_dim, out_dim=out_dim,
                n_pad=n_pad, k_pad=k_pad, tn=tn, tk=tk,
                compute_dtype=compute_dtype, tm_default=tm_d)


# --------------------------------------------------------------------------- #
# Apply: x (..., in_dim) @ W^T + b with already-prepared params.
# --------------------------------------------------------------------------- #
def linear_norm_apply(x, params, *, tm=None):
    *lead, in_dim = x.shape
    assert in_dim == params["in_dim"], "x last dim must equal in_dim"
    out_dim = params["out_dim"]
    out_dtype = x.dtype
    cdt = params["compute_dtype"]
    tn, tk = params["tn"], params["tk"]
    n_pad, k_pad = params["n_pad"], params["k_pad"]

    m = int(math.prod(lead)) if lead else 1
    x2 = x.reshape(m, in_dim).astype(cdt)

    sub = _sublane(cdt)
    tm = _pick_tile_m(m, tm or params["tm_default"], sub)
    m_pad = _round_up(m, tm)

    # v7x megacore coverage: if the grid collapsed to (1, 1, K), split M so the
    # "parallel" axes still have >= 2 blocks (one per TensorCore).
    if m_pad // tm == 1 and n_pad // tn == 1:
        m_sub = _round_up(m, sub)
        if m_sub >= 2 * sub:
            tm = _round_up(-(-m_sub // 2), sub)
            m_pad = _round_up(m, tm)

    if (m_pad, k_pad) != (m, in_dim):
        x2 = jnp.pad(x2, ((0, m_pad - m), (0, k_pad - in_dim)))

    grid = (m_pad // tm, n_pad // tn, k_pad // tk)

    in_bytes = jnp.dtype(cdt).itemsize
    out_bytes = jnp.dtype(out_dtype).itemsize
    # Double-buffered inputs + output + f32 accumulator + bias row.
    vmem_est = (2 * (tm * tk + tk * tn) * in_bytes
                + 2 * tm * tn * out_bytes
                + tm * tn * 4
                + 2 * tn * 4)
    # Explicit scoped-VMEM limit with headroom; capped for v7x's 64 MiB VMEM.
    vmem_limit = int(min(56 << 20, max(32 << 20, int(1.3 * vmem_est))))

    bytes_accessed = int(x2.size * x2.dtype.itemsize
                         + params["w"].size * params["w"].dtype.itemsize
                         + params["b"].size * params["b"].dtype.itemsize
                         + m_pad * n_pad * out_bytes)

    out = pl.pallas_call(
        _linear_kernel,
        out_shape=jax.ShapeDtypeStruct((m_pad, n_pad), out_dtype),
        grid_spec=pltpu.PrefetchScalarGridSpec(
            num_scalar_prefetch=0,
            grid=grid,
            in_specs=[
                pl.BlockSpec((tm, tk), lambda i, j, k: (i, k)),   # x
                pl.BlockSpec((tk, tn), lambda i, j, k: (k, j)),   # W (K-major)
                pl.BlockSpec((1, tn), lambda i, j, k: (0, j)),    # bias row
            ],
            out_specs=pl.BlockSpec((tm, tn), lambda i, j, k: (i, j)),
            scratch_shapes=[pltpu.VMEM((tm, tn), jnp.float32)],
        ),
        compiler_params=pltpu.CompilerParams(
            dimension_semantics=("parallel", "parallel", "arbitrary"),
            vmem_limit_bytes=vmem_limit,
        ),
        cost_estimate=pl.CostEstimate(
            flops=2 * m_pad * n_pad * k_pad,
            transcendentals=0,
            bytes_accessed=bytes_accessed,
        ),
    )(x2, params["w"], params["b"])

    out = out[:m, :out_dim]
    return out.reshape(*lead, out_dim)


def linear_norm(x, weight, bias=None, *, compute_dtype=None,
                tm=None, tn=None, tk=None):
    """Convenience one-shot wrapper (prep + apply). Prefer prepare_* once per
    layer and linear_norm_apply per call in real models."""
    params = prepare_linear_norm_params(weight, bias,
                                        compute_dtype=compute_dtype,
                                        tn=tn, tk=tk)
    return linear_norm_apply(x, params, tm=tm)


def init_linear_norm_params(key, in_dim, out_dim, w_init_gain="linear",
                            dtype=jnp.float32):
    """Xavier-uniform weight (gain per w_init_gain) + PyTorch-default bias init."""
    gain = 1.0  # calculate_gain('linear') == 1.0
    k_w, k_b = jax.random.split(key)
    limit = gain * math.sqrt(6.0 / (in_dim + out_dim))
    weight = jax.random.uniform(k_w, (out_dim, in_dim), dtype=dtype,
                                minval=-limit, maxval=limit)
    b_bound = 1.0 / math.sqrt(in_dim)
    bias = jax.random.uniform(k_b, (out_dim,), dtype=dtype,
                              minval=-b_bound, maxval=b_bound)
    return weight, bias


if __name__ == "__main__":
    key = jax.random.PRNGKey(0)
    k_x, k_p, k_x2, k_p2 = jax.random.split(key, 4)

    # --- small module-shaped case (padded internally to (8,128) tiles) ---
    batch, seq, in_dim, out_dim = 2, 8, 32, 64
    x = jax.random.normal(k_x, (batch, seq, in_dim), dtype=jnp.float32)
    weight, bias = init_linear_norm_params(k_p, in_dim, out_dim)

    y = linear_norm(x, weight, bias)
    y = jax.block_until_ready(y)
    y_ref = x @ weight.T + bias
    assert y.shape == (batch, seq, out_dim)
    assert jnp.allclose(y, y_ref, atol=1e-3, rtol=1e-3)

    # --- larger, tile-aligned case: one-time weight prep + K-accumulator path ---
    b2_, s2_, in2, out2 = 4, 64, 1024, 512   # M=256, K=1024 (2 k-steps), N=512
    x_big = jax.random.normal(k_x2, (b2_, s2_, in2), dtype=jnp.float32)
    w_big, bias_big = init_linear_norm_params(k_p2, in2, out2)

    prepped = prepare_linear_norm_params(w_big, bias_big)   # once per layer
    y_big = linear_norm_apply(x_big, prepped)
    y_big = jax.block_until_ready(y_big)
    y_big_ref = x_big @ w_big.T + bias_big
    assert y_big.shape == (b2_, s2_, out2)
    assert jnp.allclose(y_big, y_big_ref, atol=1e-2, rtol=1e-3)

    print("KERNEL_OK")
</pallas_src>

<mosaic_0001>
module attributes {stable_mosaic.version = 11 : i64} {
  func.func @_linear_kernel(%arg0: i32, %arg1: i32, %arg2: i32, %arg3: memref<8x128xf32, #tpu.memory_space<vmem>>, %arg4: memref<128x128xf32, #tpu.memory_space<vmem>>, %arg5: memref<1x128xf32, #tpu.memory_space<vmem>>, %arg6: memref<8x128xf32, #tpu.memory_space<vmem>>, %arg7: memref<8x128xf32, #tpu.memory_space<vmem>>) attributes {dimension_semantics = [#tpu.dimension_semantics<parallel>, #tpu.dimension_semantics<parallel>, #tpu.dimension_semantics<arbitrary>], iteration_bounds = array<i64: 2, 1, 1>, scalar_prefetch = 0 : i64, scratch_operands = 1 : i64, tpu.core_type = #tpu.core_type<tc>, window_params = [{transform_indices = @transform_0, window_bounds = array<i64: 8, 128>}, {transform_indices = @transform_1, window_bounds = array<i64: 128, 128>}, {transform_indices = @transform_2, window_bounds = array<i64: 1, 128>}, {transform_indices = @transform_3, window_bounds = array<i64: 8, 128>}]} {
    %c0_i32 = arith.constant 0 : i32
    %0 = arith.cmpi eq, %arg2, %c0_i32 : i32
    %1 = arith.extui %0 : i1 to i32
    %c0_i32_0 = arith.constant 0 : i32
    %2 = arith.cmpi ne, %1, %c0_i32_0 : i32
    scf.if %2 {
      %c0_10 = arith.constant 0 : index
      %c0_11 = arith.constant 0 : index
      %12 = vector.load %arg5[%c0_10, %c0_11] : memref<1x128xf32, #tpu.memory_space<vmem>>, vector<1x128xf32>
      %13 = vector.shape_cast %12 : vector<1x128xf32> to vector<1x128xf32>
      %14 = vector.broadcast %13 : vector<1x128xf32> to vector<8x128xf32>
      %c0_12 = arith.constant 0 : index
      %c0_13 = arith.constant 0 : index
      %15 = vector.load %arg7[%c0_12, %c0_13] : memref<8x128xf32, #tpu.memory_space<vmem>>, vector<8x128xf32>
      tpu.vector_store %arg7[%c0_12, %c0_13], %14 {strides = array<i32>} : memref<8x128xf32, #tpu.memory_space<vmem>>, vector<8x128xf32>,
    } else {
    }
    %c0 = arith.constant 0 : index
    %c0_1 = arith.constant 0 : index
    %3 = vector.load %arg7[%c0, %c0_1] : memref<8x128xf32, #tpu.memory_space<vmem>>, vector<8x128xf32>
    %c0_2 = arith.constant 0 : index
    %c0_3 = arith.constant 0 : index
    %4 = vector.load %arg3[%c0_2, %c0_3] : memref<8x128xf32, #tpu.memory_space<vmem>>, vector<8x128xf32>
    %c0_4 = arith.constant 0 : index
    %c0_5 = arith.constant 0 : index
    %5 = vector.load %arg4[%c0_4, %c0_5] : memref<128x128xf32, #tpu.memory_space<vmem>>, vector<128x128xf32>
    %cst = arith.constant dense<0.000000e+00> : vector<8x128xf32>
    %6 = tpu.matmul %4, %5, %cst {dimension_numbers = #tpu.dot_dimension_numbers<[1], [0], [0], [1], [0, 0, 1, 1], [], []>} : vector<8x128xf32>, vector<128x128xf32>, vector<8x128xf32> -> vector<8x128xf32>
    %7 = arith.addf %3, %6 : vector<8x128xf32>
    %c0_6 = arith.constant 0 : index
    %c0_7 = arith.constant 0 : index
    %8 = vector.load %arg7[%c0_6, %c0_7] : memref<8x128xf32, #tpu.memory_space<vmem>>, vector<8x128xf32>
    tpu.vector_store %arg7[%c0_6, %c0_7], %7 {strides = array<i32>} : memref<8x128xf32, #tpu.memory_space<vmem>>, vector<8x128xf32>,
    %c0_i32_8 = arith.constant 0 : i32
    %9 = arith.cmpi eq, %arg2, %c0_i32_8 : i32
    %10 = arith.extui %9 : i1 to i32
    %c0_i32_9 = arith.constant 0 : i32
    %11 = arith.cmpi ne, %10, %c0_i32_9 : i32
    scf.if %11 {
      %c0_10 = arith.constant 0 : index
      %c0_11 = arith.constant 0 : index
      %12 = vector.load %arg7[%c0_10, %c0_11] : memref<8x128xf32, #tpu.memory_space<vmem>>, vector<8x128xf32>
      %c0_12 = arith.constant 0 : index
      %c0_13 = arith.constant 0 : index
      %13 = vector.load %arg6[%c0_12, %c0_13] : memref<8x128xf32, #tpu.memory_space<vmem>>, vector<8x128xf32>
      tpu.vector_store %arg6[%c0_12, %c0_13], %12 {strides = array<i32>} : memref<8x128xf32, #tpu.memory_space<vmem>>, vector<8x128xf32>,
    } else {
    }
    return
  }
  func.func @transform_0(%arg0: i32, %arg1: i32, %arg2: i32) -> (i32, i32) {
    %c0_i32 = arith.constant 0 : i32
    return %arg0, %arg2 : i32, i32
  }
  func.func @transform_1(%arg0: i32, %arg1: i32, %arg2: i32) -> (i32, i32) {
    %c0_i32 = arith.constant 0 : i32
    return %arg2, %arg1 : i32, i32
  }
  func.func @transform_2(%arg0: i32, %arg1: i32, %arg2: i32) -> (i32, i32) {
    %c0_i32 = arith.constant 0 : i32
    %c0_i32_0 = arith.constant 0 : i32
    return %c0_i32, %arg1 : i32, i32
  }
  func.func @transform_3(%arg0: i32, %arg1: i32, %arg2: i32) -> (i32, i32) {
    %c0_i32 = arith.constant 0 : i32
    return %arg0, %arg1 : i32, i32
  }
}

</mosaic_0001>

<bundles_post_ra>
// kernel: tpu_custom_call.1
= control target key start
LH: loop header
LB: loop body
LE: loop exit
PB: predicated region body
PF: predicated region fallthrough
CT: control target
= control target key end

     0   :  { %8 = vsyncpa [#allocation4], 0  ;;  %s1051_s0 = inlined_call_operand.hbm [shape: f32[16,128], index: 0, kind: input, shape index: {}]   ;;  %s1052_s1 = inlined_call_operand.hbm [shape: f32[128,128], index: 1, kind: input, shape index: {}]   ;;  %s1053_s2 = inlined_call_operand.vmem [shape: f32[1,128], index: 2, kind: input, shape index: {}]   ;;  %s1054_s3 = inlined_call_operand.hbm [shape: f32[16,128], index: 3, kind: output, shape index: {}]  }
   0x1   :  { %10 = vsyncpa [#allocation4 + $0x1], 0 }
   0x2   :  { %11 = vsyncpa [#allocation7], 0 }
   0x3   :  { %12 = vsyncpa [#allocation5], 0 }
   0x4   :  { %14 = vsyncpa [#allocation5 + $0x1], 0  ;;  %s827_s12 = smov 0   ;;  %s829_s13 = smov 0  }
   0x5   :  { %s831_s14 = smov 0   ;;  %s833_s15 = smov 0  }
   0x6   :  { %s835_s16 = smov 0   ;;  %s837_s17 = smov 0  }
   0x7 LB: > { %s482_s18 = sadd.s32 4294967295, %s797_s17   ;;  %s483_s19 = sadd.s32 4294967294, %s797_s17   ;;  %s797_s17 = sphi %s837_s17, %s20_s17   ;;  %s793_s16 = sphi %s835_s16, %s1078_s16   ;;  %s789_s15 = sphi %s833_s15, %s1077_s15   ;;  %s785_s14 = sphi %s831_s14, %s1076_s14   ;;  %s781_s13 = sphi %s829_s13, %s1075_s13   ;;  %s777_s12 = sphi %s827_s12, %s1074_s12  }
   0x8   : > { %p61_p0 = scmp.ne.s32.totalorder %s781_s13, %s777_s12  ;;  %p861_p1 = scmp.eq.s32.totalorder %s482_s18, 0 }
   0x9   : > { %p865_p2 = scmp.eq.s32.totalorder %s482_s18, 1  ;;  %p147_p3 = scmp.eq.s32.totalorder %s483_s19, 1 }
   0xa   : > { %s1059_s20 = scalar_select %p861_p1, 1, 0 }
   0xb   : > { %s1060_s21 = scalar_select %p865_p2, 1, 0 }
   0xc   : > { %p871_p4 = por %p861_p1, %p61_p0  ;;  %p484_p5 = scmp.ge.s32.totalorder %s797_s17, 1 }
   0xd   : > { %p876_p6 = por %p147_p3, %p61_p0  ;;  %p154_p7 = scmp.lt.s32.totalorder %s797_s17, 3 }
   0xe   : > { %s1061_s22 = scalar_select %p871_p4, 1, 0 }
   0xf   : > { %s1062_s23 = scalar_select %p876_p6, 1, 0 }
  0x10   : > { %p881_p8 = pnand %p484_p5, %p154_p7  ;;  %s799_s25 = smov [#allocation6]  }
  0x11   : > { %s170_s26 = sshll.u32 %s799_s25, 4  ;;  %s39_s28 = sadd.s32 1, %s793_s16  ;;  %s171_s26 = int_to_ptr.vmem [resolvable:$true] %s170_s26 }
  0x12   : > { %s1063_s24 = scalar_select %p881_p8, 1, 0 }
  0x13   : > { %p583_p9 = pneg %p881_p8  ;;  %s653_s4 = scalar_lea.hbm %s1052_s1, 2048 }
  0x14   : > { %p654_p12 = scmp.ne.s32.totalorder %s1052_s1, %s653_s4  ;;  %p660_p5 = scmp.lt.u32.totalorder %s653_s4, %s1052_s1 }
  0x15   : > { %p890_p11 = pnand %p583_p9, %p861_p1 }
  0x17   : > { %p655_p13 = pneg %p890_p11 }
  0x19   : > { %p656_p0 = pnand %p655_p13, %p654_p12 }
  0x1b   : > { %p657_p3 = pneg %p656_p0 }
  0x1d   : > { %p662_p7 = pnand %p660_p5, %p657_p3 }
  0x1f   : > { %665 = shalt.err (!%p662_p7)
}
  0x20   : > { %s666_s9 = scalar_lea.vmem %s171_s26, 2048  ;;  %p674_p1 = scmp.lt.s32.totalorder %s171_s26, %s171_s26 }
  0x21   : > { %p667_p9 = scmp.ne.s32.totalorder %s171_s26, %s666_s9  ;;  %p675_p4 = scmp.lt.s32.totalorder %s666_s9, %s666_s9 }
  0x23   : > { %p669_p10 = pnand %p667_p9, %p655_p13  ;;  %p676_p8 = por %p675_p4, %p674_p1 }
  0x25   : > { %p670_p6 = pneg %p669_p10 }
  0x27   : > { %p677_p2 = pnand %p676_p8, %p670_p6 }
  0x29   : > { %680 = shalt.err (!%p677_p2)
}
  0x2a   : > { %s800_s10 = smov 128   ;;  %s801_s11 = smov 8  }
  0x2b   : > { %586 = dma.hbm_to_vmem [thread:$0]  (!%p890_p11), %s1052_s1, 2048, %s171_s26, [#allocation7], %s800_s10, %s800_s10, %s801_s11  }
  0x2c   : > { %p41_p1 = scmp.ge.s32.totalorder %s39_s28, 2  ;;  %s48_s25 = sadd.s32 1, %s785_s14 }
  0x2d   : > { %p55_p2 = scmp.ne.s32.totalorder %s785_s14, %s781_s13  ;;  %p56_p4 = scmp.eq.s32.totalorder %s797_s17, 0 }
  0x2e   : > { %s1080_s28 = smov (%p41_p1, %s39_s28), 0  ;;  %p1066_p8 = scmp.ne.s32.totalorder %s1060_s21, 0 }
  0x2f   : > { %p917_p6 = por %p56_p4, %p55_p2  ;;  %s43_s27 = ssub.s32 %s793_s16, %s1080_s28 }
  0x30   : > { %p923_p10 = por %p1066_p8, %p55_p2  ;;  %p596_p12 = scmp.lt.s32.totalorder %s797_s17, 2 }
  0x31   : > { %p46_p11 = scmp.eq.s32.totalorder %s43_s27, 0  ;;  %s190_s26 = sand.u32 1, %s785_s14  }
  0x32   : > { %s488_s4 = sshll.u32 %s190_s26, 3  ;;  %s489_s6 = sshll.u32 %s793_s16, 7 }
  0x33   : > { %s932_s5 = scalar_select %p46_p11, %s785_s14, %s48_s25  }
  0x34   : > { %s938_s9 = scalar_lea.hbm %s1051_s0, %s489_s6  ;;  %s194_s21 = scalar_lea.vmem [#allocation3], %s488_s4 }
  0x35   : > { %s202_s10 = sshll.u32 %s194_s21, 4  ;;  %p944_p13 = pnand %p596_p12, %p917_p6  ;;  %s940_s10 = int_to_ptr.vmem [resolvable:$true] %s202_s10 }
  0x36   : > { %s191_s18 = scalar_lea.sflag [#allocation4], %s190_s26  ;;  %s681_s19 = scalar_lea.hbm %s938_s9, 128 }
  0x37   : > { %p682_p0 = scmp.ne.s32.totalorder %s938_s9, %s681_s19  ;;  %p683_p3 = pneg %p944_p13 }
  0x38   : > { %s686_s4 = scalar_lea.hbm %s1051_s0, 256  ;;  %p687_p9 = scmp.lt.u32.totalorder %s938_s9, %s1051_s0 }
  0x39   : > { %p684_p5 = pnand %p683_p3, %p682_p0  ;;  %p688_p1 = scmp.lt.u32.totalorder %s686_s4, %s681_s19 }
  0x3a   : > { %p690_p4 = scmp.lt.u32.totalorder %s681_s19, %s938_s9 }
  0x3b   : > { %p685_p7 = pneg %p684_p5  ;;  %p689_p2 = por %p688_p1, %p687_p9 }
  0x3d   : > { %p691_p6 = por %p690_p4, %p689_p2 }
  0x3f   : > { %p692_p8 = pnand %p691_p6, %p685_p7 }
  0x41   : > { %695 = shalt.err (!%p692_p8)
}
  0x42   : > { %s696_s26 = scalar_lea.vmem %s940_s10, 128  ;;  %s802_s7 = smov [#allocation3]  }
  0x43   : > { %p697_p12 = scmp.ne.s32.totalorder %s940_s10, %s696_s26  ;;  %s701_s8 = sshll.u32 %s802_s7, 4  ;;  %s702_s8 = int_to_ptr.vmem [resolvable:$false] %s701_s8 }
  0x44   : > { %s703_s21 = scalar_lea.vmem %s702_s8, 256  ;;  %p704_p5 = scmp.lt.s32.totalorder %s940_s10, %s702_s8 }
  0x45   : > { %p699_p11 = pnand %p697_p12, %p683_p3  ;;  %p705_p9 = scmp.lt.s32.totalorder %s703_s21, %s696_s26 }
  0x47   : > { %p700_p0 = pneg %p699_p11  ;;  %p706_p1 = por %p705_p9, %p704_p5 }
  0x49   : > { %p707_p2 = pnand %p706_p1, %p700_p0 }
  0x4b   : > { %710 = shalt.err (!%p707_p2)
}
  0x4c   : > { %590 = dma.hbm_to_vmem [thread:$0]  (!%p944_p13), %s938_s9, 128, %s940_s10, %s191_s18  }
  0x4d   : > { %p1069_p7 = scmp.ne.s32.totalorder %s1063_s24, 0 }
  0x4e   : > { %s976_s19 = sand.u32 (!%p1069_p7), 1, %s781_s13   ;;  %p1070_p3 = scmp.ne.s32.totalorder (!%p1069_p7), %s1061_s22, 0 }
  0x4f   : > { %211 = sbr.rel (%p1069_p7) target bundleno = 353 (0x161), region = 32  ;;  %s491_s25 = sshll.u32 (!%p1069_p7), %s976_s19, 3 }
  0x50   : > { %s214_s27 = scalar_lea.sflag (!%p1069_p7), [#allocation4], %s976_s19  ;;  %s982_s4 = scalar_lea.vmem (!%p1069_p7), [#allocation3], %s491_s25 }
  0x56   : > { %764 = dma.done.wait (%p1070_p3), %s214_s27, 128  }
  0x57   : > { %766 = vsyncadd (%p1070_p3), %s214_s27, 4294967168  ;;  %p1071_p13 = scmp.ne.s32.totalorder %s1059_s20, 0 }
  0x59   : > { %768 = dma.done.wait (%p1071_p13), [#allocation7], 2048  }
  0x5a   : > { %770 = vsyncadd (%p1071_p13), [#allocation7], 4294965248  ;;  %v803_v0 = vmov 0.0|0.0   ;;  %vm804_vm0 = vmmov 0   ;;  %v805_v1 = vmov 0.0   ;;  %v265_v2 = vld [vmem:[#allocation6] sm:$0xff] }
  0x5b   : > { %551 = vmatprep.subr.bf16.mxu0 %v803_v0  ;;  %548 = vmatprep.mubr.msk.f32.mxu0 %vm804_vm0, %v805_v1  ;;  %v266_v3 = vld [vmem:[#allocation6 + $0x8] sm:$0xff]  ;;  %v267_v4 = vld [vmem:[#allocation6 + $0x10] sm:$0xff]  ;;  %v268_v6 = vld [vmem:[#allocation6 + $0x18] sm:$0xff]  ;;  %s496_s24 = sshll.u32 %s789_s15, 7  ;;  %s246_s9 = scalar_lea.vmem [#allocation8], %s491_s25 }
  0x5c   : > { %v552_v5 = vpack.c.bf16 %v266_v3, %v265_v2  ;;  %v555_v7 = vpack.c.bf16 %v268_v6, %v267_v4  ;;  %v269_v8 = vld [vmem:[#allocation6 + $0x20] sm:$0xff]  ;;  %v270_v9 = vld [vmem:[#allocation6 + $0x28] sm:$0xff]  ;;  %v271_v11 = vld [vmem:[#allocation6 + $0x30] sm:$0xff]  ;;  %s373_s10 = sshll.u32 %s246_s9, 4  ;;  %s1002_s29 = scalar_lea.hbm %s1054_s3, %s496_s24  ;;  %s1004_s10 = int_to_ptr.vmem [resolvable:$true] %s373_s10 }
  0x5d   : > { %v558_v10 = vpack.c.bf16 %v270_v9, %v269_v8  ;;  %v272_v12 = vld [vmem:[#allocation6 + $0x38] sm:$0xff]  ;;  %v273_v14 = vld [vmem:[#allocation6 + $0x40] sm:$0xff]  ;;  %v274_v15 = vld [vmem:[#allocation6 + $0x48] sm:$0xff]  ;;  %s359_s6 = scalar_lea.sflag [#allocation5], %s976_s19  ;;  %s711_s26 = scalar_lea.vmem %s1004_s10, 128 }
  0x5e   : > { %553 = vmatpush3.bf16.msra.mxu0 %v552_v5  ;;  %v561_v13 = vpack.c.bf16 %v272_v12, %v271_v11  ;;  %v564_v16 = vpack.c.bf16 %v274_v15, %v273_v14  ;;  %v275_v17 = vld [vmem:[#allocation6 + $0x50] sm:$0xff]  ;;  %v276_v18 = vld [vmem:[#allocation6 + $0x58] sm:$0xff]  ;;  %v277_v20 = vld [vmem:[#allocation6 + $0x60] sm:$0xff]  ;;  %p712_p4 = scmp.ne.s32.totalorder %s1004_s10, %s711_s26  ;;  %s806_s15 = smov [#allocation8]  }
  0x5f   : > { %554 = vmatprep.subr.bf16.mxu0 %v803_v0  ;;  %v567_v19 = vpack.c.bf16 %v276_v18, %v275_v17  ;;  %v278_v21 = vld [vmem:[#allocation6 + $0x68] sm:$0xff]  ;;  %v279_v23 = vld [vmem:[#allocation6 + $0x70] sm:$0xff]  ;;  %v280_v24 = vld [vmem:[#allocation6 + $0x78] sm:$0xff]  ;;  %s715_s7 = sshll.u32 %s806_s15, 4  ;;  %s716_s7 = int_to_ptr.vmem [resolvable:$false] %s715_s7 }
  0x60   : > { %v570_v22 = vpack.c.bf16 %v278_v21, %v277_v20  ;;  %v573_v25 = vpack.c.bf16 %v280_v24, %v279_v23  ;;  %v264_v26 = vld [vmem:[%s982_s4] sm:$0xff]  ;;  %p713_p6 = pnand %p712_p4, %p923_p10  ;;  %s717_s8 = scalar_lea.vmem %s716_s7, 256 }
  0x61   : > { %v494_v27 = vld [vmem:[%s1053_s2] ss:$0 sm:$0xff]  ;;  %p718_p12 = scmp.lt.s32.totalorder %s1004_s10, %s716_s7  ;;  %p719_p11 = scmp.lt.s32.totalorder %s717_s8, %s711_s26 }
  0x62   : > { %556 = vmatpush3.bf16.msra.mxu0 %v555_v7  ;;  %p714_p8 = pneg %p713_p6 }
  0x63   : > { %557 = vmatprep.subr.bf16.mxu0 %v803_v0  ;;  %p720_p0 = por %p719_p11, %p718_p12 }
  0x65   : > { %p721_p5 = pnand %p720_p0, %p714_p8 }
  0x66   : > { %559 = vmatpush3.bf16.msra.mxu0 %v558_v10 }
  0x67   : > { %560 = vmatprep.subr.bf16.mxu0 %v803_v0 }
  0x6a   : > { %562 = vmatpush3.bf16.msra.mxu0 %v561_v13 }
  0x6b   : > { %563 = vmatprep.subr.bf16.mxu0 %v803_v0 }
  0x6e   : > { %565 = vmatpush3.bf16.msra.mxu0 %v564_v16 }
  0x6f   : > { %566 = vmatprep.subr.bf16.mxu0 %v803_v0 }
  0x72   : > { %568 = vmatpush3.bf16.msra.mxu0 %v567_v19 }
  0x73   : > { %569 = vmatprep.subr.bf16.mxu0 %v803_v0 }
  0x76   : > { %571 = vmatpush3.bf16.msra.mxu0 %v570_v22 }
  0x77   : > { %572 = vmatprep.subr.bf16.mxu0 %v803_v0 }
  0x7a   : > { %574 = vmatpush3.bf16.msra.mxu0 %v573_v25 }
  0x7d   : > { %549 = vmatmul.mubr.f32.vlgmr.msra.gmra.mrb[0].mxu0 %v264_v26 }
 0x150   : > { %v347_v28 = vpop.f32.mrb[0].mxu0 }
 0x151   : > { %v351_v29 = vadd.f32 %v494_v27, %v347_v28  ;;  %v550_v30 = vpop.f32.mrb[1].mxu0 }
 0x153   : > { %357 = vst [vmem:[%s246_s9] sm:$0xff] %v351_v29 }
 0x154   : > { %724 = shalt.err (!%p721_p5)
}
 0x155   : > { %s725_s21 = scalar_lea.hbm %s1002_s29, 128  ;;  %s729_s27 = scalar_lea.hbm %s1054_s3, 256 }
 0x156   : > { %p726_p9 = scmp.ne.s32.totalorder %s1002_s29, %s725_s21  ;;  %p730_p7 = scmp.lt.u32.totalorder %s1002_s29, %s1054_s3 }
 0x157   : > { %p731_p3 = scmp.lt.u32.totalorder %s729_s27, %s725_s21  ;;  %p733_p4 = scmp.lt.u32.totalorder %s725_s21, %s1002_s29 }
 0x158   : > { %p727_p1 = pnand %p726_p9, %p923_p10 }
 0x159   : > { %p732_p13 = por %p731_p3, %p730_p7 }
 0x15a   : > { %p728_p2 = pneg %p727_p1 }
 0x15b   : > { %p734_p6 = por %p733_p4, %p732_p13 }
 0x15d   : > { %p735_p8 = pnand %p734_p6, %p728_p2 }
 0x15f   : > { %738 = shalt.err (!%p735_p8)
}
 0x160   : > { %581 = dma.vmem_to_hbm [thread:$0]  (%p923_p10), %s1004_s10, 128, %s1002_s29, %s359_s6  }
 0x161 PF: > { %s385_s22 = sand.u32 1, %s777_s12   ;;  %p1072_p12 = scmp.ne.s32.totalorder %s1062_s23, 0 }
 0x162   : > { %p1073_p11 = scmp.ge.s32.totalorder %s797_s17, 2  ;;  %s386_s24 = scalar_lea.sflag [#allocation5], %s385_s22 }
 0x164   : > { %p592_p0 = pnand %p1073_p11, %p1072_p12 }
 0x166   : > { %772 = dma.done.wait (!%p592_p0), %s386_s24, 128  }
 0x167   : > { %774 = vsyncadd (!%p592_p0), %s386_s24, 4294967168  ;;  %s20_s17 = sadd.s32 1, %s797_s17   ;;  %s1074_s12 = smov %s781_s13 }
 0x168   : > { %p17_p5 = scmp.ge.s32.totalorder %s20_s17, 4   ;;  %s1075_s13 = smov %s785_s14 }
 0x169   : > { %s1076_s14 = smov %s932_s5  ;;  %s1077_s15 = smov %s793_s16 }
 0x16a   : > { %s1078_s16 = smov %s1080_s28  ;;  %19 = sbr.rel (!%p17_p5) target bundleno = 7 (0x7), region = 93 }
 0x171   :  { %391 = vsyncpa [#allocation4], 1 }
 0x172   :  { %393 = vsyncpa [#allocation4 + $0x1], 1 }
 0x173   :  { %394 = vsyncpa [#allocation7], 1 }
 0x174   :  { %395 = vsyncpa [#allocation5], 1 }
 0x175   :  { %397 = vsyncpa [#allocation5 + $0x1], 1 }

</bundles_post_ra>
